<compile_context>
chip_gen: v7x
topology: tpu7x:2x2x1
jax: 0.10.0
libtpu: 0.0.40
codegen_flags: <defaults>
</compile_context>

<pallas_src>
import functools

import jax
import jax.numpy as jnp
from jax.experimental import pallas as pl
from jax.experimental.pallas import tpu as pltpu


def _round_up(x, m):
    return (x + m - 1) // m * m


# --------------------------------------------------------------------------- #
# Kernel
# --------------------------------------------------------------------------- #
def _link_decode_kernel(x0_ref, y0_ref, x1_ref, y1_ref,
                        w_src_ref, w_dst_ref, b_sd_ref,
                        w_out_ref, b_out_ref, w_we_ref,
                        probs_ref, *, c, r, t):
    f32 = jnp.float32

    # ---------------- hyperbolic branch (Poincare ball, curvature k = -c) ----
    # dist(x, y) = 2/sqrt(c) * artanh( sqrt(c) * || mobius_add_c(-x, y) || )
    # mobius_add_c(-x, y) = (cx*x + cy*y) / den ; everything below is built
    # from three lane reductions only (no (T, D) temporaries, scalar divides).
    x0 = x0_ref[...].astype(f32)
    y0 = y0_ref[...].astype(f32)
    x2 = jnp.sum(x0 * x0, axis=-1, keepdims=True)            # (T, 1)
    y2 = jnp.sum(y0 * y0, axis=-1, keepdims=True)            # (T, 1)
    xy = jnp.sum(x0 * y0, axis=-1, keepdims=True)            # (T, 1)
    cx = -(1.0 - 2.0 * c * xy + c * y2)                      # coefficient of x0
    cy = 1.0 - c * x2                                        # coefficient of y0
    den = jnp.maximum(1.0 - 2.0 * c * xy + (c * c) * x2 * y2, 1e-15)
    num2 = cx * cx * x2 + 2.0 * cx * cy * xy + cy * cy * y2  # ||cx*x0 + cy*y0||^2
    nrm = jnp.sqrt(jnp.maximum(num2, 0.0)) / den             # exact (T,1) divide
    sqrt_c = c ** 0.5
    z = jnp.clip(sqrt_c * nrm, 0.0, 1.0 - 1e-5)              # artanh domain clamp
    dist = (1.0 / sqrt_c) * jnp.log((1.0 + z) / (1.0 - z))   # = 2/sqrt_c*artanh(z)
    sqdist = dist * dist
    # Fermi-Dirac 1/(exp(min((d-r)/t,50))+1) == sigmoid((r-d)/t)  (overflow-safe)
    probs_h = jax.nn.sigmoid((r - sqdist) * (1.0 / t))

    # ---------------- Euclidean branch ----------------------------------------
    # s = fc_src(x1) + fc_dst(y1): two K=D matmuls into one f32 accumulator.
    s = (jnp.dot(x1_ref[...], w_src_ref[...], preferred_element_type=f32)
         + jnp.dot(y1_ref[...], w_dst_ref[...], preferred_element_type=f32)
         + b_sd_ref[...])
    # scalar heads: VPU multiply + lane reduce with (1, D) weight rows
    probs_e = jax.nn.sigmoid(
        jnp.sum(jnp.maximum(s, 0.0) * w_out_ref[...], axis=-1, keepdims=True)
        + b_out_ref[...])
    w_e = jax.nn.sigmoid(jnp.sum(s * w_we_ref[...], axis=-1, keepdims=True))

    # ---------------- blend:  (1 - w_e) * probs_h + w_e * probs_e -------------
    probs_ref[...] = (probs_h + w_e * (probs_e - probs_h)).astype(probs_ref.dtype)


# --------------------------------------------------------------------------- #
# Wrapper
# --------------------------------------------------------------------------- #
def link_decoder_forward(h0, h1, params, c, neg_samples=1, tile_rows=1024,
                         stream_dtype=None):
    """Replicates LinkDecoder_new.forward(h=(h0, h1), neg_samples) -> (pos, neg)."""
    total, d = h0.shape
    n_sections = neg_samples + 2
    num_edge = total // n_sections
    n_samp = neg_samples + 1

    if stream_dtype is not None:
        h0 = h0.astype(stream_dtype)
        h1 = h1.astype(stream_dtype)
        w_src = params["w_src"].astype(stream_dtype)
        w_dst = params["w_dst"].astype(stream_dtype)
    else:
        w_src = params["w_src"].astype(jnp.float32)
        w_dst = params["w_dst"].astype(jnp.float32)

    # Free reshapes (leading-dim split, no HBM copy): section 0 = src rows,
    # section 1 = positive dst rows, section 2+s = dst rows of neg sample s.
    h0_3d = h0.reshape(n_sections, num_edge, d)
    h1_3d = h1.reshape(n_sections, num_edge, d)

    b_sd = (params["b_src"] + params["b_dst"]).astype(jnp.float32)   # (1, D)
    w_out = params["w_out"].reshape(1, d).astype(jnp.float32)        # (1, D) row
    b_out = params["b_out"].astype(jnp.float32)                      # (1, 1)
    w_we = params["w_we"].reshape(1, d).astype(jnp.float32)          # (1, D) row

    itemsize = jnp.dtype(h0_3d.dtype).itemsize
    sub = max(8, 32 // itemsize)             # sublane multiple: 8 (f32), 16 (bf16)

    # Row tile: multiple of `sub`, capped by tile_rows, shrunk to a VMEM budget.
    tile = min(tile_rows, _round_up(num_edge, sub))
    tile = max(sub, (tile // sub) * sub)

    def vmem_estimate(t):
        d_pad = _round_up(d, 128)
        est = 4 * 2 * t * d_pad * itemsize                      # 4 streams, 2 buffers
        est += 2 * 2 * _round_up(d, sub) * d_pad * itemsize     # w_src / w_dst
        est += 6 * 8 * 128 * 4                                  # small row operands
        est += 2 * t * 128 * 4                                  # output blocks
        est += 4 * t * d_pad * 4                                # f32 temporaries
        return est

    budget = 20 * 1024 * 1024                # conservative across v5e / v6e / v7x
    while tile > sub and vmem_estimate(tile) > budget:
        tile = max(sub, ((tile // 2) // sub) * sub)
    vmem_limit = int(min(max(vmem_estimate(tile) * 2, 32 * 1024 * 1024),
                         48 * 1024 * 1024))

    n_tiles = pl.cdiv(num_edge, tile)
    grid = (n_tiles, n_samp)                 # edge tile outer, sample inner

    rows = n_samp * num_edge
    cost = pl.CostEstimate(
        flops=int(rows * (4 * d * d + 16 * d)),
        transcendentals=int(rows * 6),
        bytes_accessed=int((num_edge + rows) * d * 2 * itemsize
                           + 2 * d * d * itemsize + rows * 4),
    )

    kernel = functools.partial(_link_decode_kernel, c=float(c), r=2.0, t=1.0)

    # src block index depends only on the outer axis -> stays VMEM-resident
    # across the inner sample axis (fetched once per edge tile).
    row_src = pl.BlockSpec((None, tile, d), lambda i, j: (0, i, 0))
    row_dst = pl.BlockSpec((None, tile, d), lambda i, j: (1 + j, i, 0))

    def resident(arr):
        nd = arr.ndim
        return pl.BlockSpec(arr.shape, lambda i, j: (0,) * nd)

    out = pl.pallas_call(
        kernel,
        grid=grid,
        out_shape=jax.ShapeDtypeStruct((n_samp, num_edge, 1), jnp.float32),
        in_specs=[row_src, row_dst, row_src, row_dst,
                  resident(w_src), resident(w_dst), resident(b_sd),
                  resident(w_out), resident(b_out), resident(w_we)],
        out_specs=pl.BlockSpec((None, tile, 1), lambda i, j: (j, i, 0)),
        compiler_params=pltpu.CompilerParams(
            dimension_semantics=("parallel", "arbitrary"),
            vmem_limit_bytes=vmem_limit),
        cost_estimate=cost,
    )(h0_3d, h0_3d, h1_3d, h1_3d, w_src, w_dst, b_sd, w_out, b_out, w_we)

    pos = out[0, :, 0]
    neg = out[1:, :, 0].reshape(-1)
    return pos, neg


# --------------------------------------------------------------------------- #
# Parameters + pure-JAX reference (tolerance check)
# --------------------------------------------------------------------------- #
def init_params(key, dim_out):
    """Deterministic synthetic parameters (torch Linear weights stored pre-transposed)."""
    ks = jax.random.split(key, 7)
    scale = 1.0 / jnp.sqrt(jnp.float32(dim_out))
    return {
        "w_src": jax.random.uniform(ks[0], (dim_out, dim_out), jnp.float32, -scale, scale),
        "b_src": jax.random.uniform(ks[1], (1, dim_out), jnp.float32, -scale, scale),
        "w_dst": jax.random.uniform(ks[2], (dim_out, dim_out), jnp.float32, -scale, scale),
        "b_dst": jax.random.uniform(ks[3], (1, dim_out), jnp.float32, -scale, scale),
        "w_out": jax.random.uniform(ks[4], (dim_out, 1), jnp.float32, -scale, scale),
        "b_out": jax.random.uniform(ks[5], (1, 1), jnp.float32, -scale, scale),
        "w_we": jax.random.uniform(ks[6], (dim_out, 1), jnp.float32, -scale, scale),
    }


def _reference_forward(h0, h1, params, c, neg_samples=1):
    """Plain-JAX replica of the torch module (HIGHEST-precision matmuls)."""
    e = h0.shape[0] // (neg_samples + 2)
    hi = jax.lax.Precision.HIGHEST

    def dec(x0, y0, x1, y1):
        a, b = -x0, y0
        a2 = jnp.sum(a * a, -1, keepdims=True)
        b2 = jnp.sum(b * b, -1, keepdims=True)
        ab = jnp.sum(a * b, -1, keepdims=True)
        num = (1 + 2 * c * ab + c * b2) * a + (1 - c * a2) * b
        den = jnp.maximum(1 + 2 * c * ab + c * c * a2 * b2, 1e-15)
        m = num / den
        nrm = jnp.sqrt(jnp.maximum(jnp.sum(m * m, -1, keepdims=True), 1e-15))
        sc = c ** 0.5
        z = jnp.clip(sc * nrm, 0.0, 1.0 - 1e-5)
        dist = (2.0 / sc) * jnp.arctanh(z)
        sqd = dist * dist
        ph = 1.0 / (jnp.exp(jnp.minimum((sqd - 2.0) / 1.0, 50.0)) + 1.0)
        s = (jnp.dot(x1, params["w_src"], precision=hi) + params["b_src"]
             + jnp.dot(y1, params["w_dst"], precision=hi) + params["b_dst"])
        pe_ = jax.nn.sigmoid(jnp.dot(jnp.maximum(s, 0.0), params["w_out"],
                                     precision=hi) + params["b_out"])
        we = jax.nn.sigmoid(jnp.dot(s, params["w_we"], precision=hi))
        return ((1.0 - we) * ph + we * pe_)[:, 0]

    pos = dec(h0[:e], h0[e:2 * e], h1[:e], h1[e:2 * e])
    neg = dec(jnp.tile(h0[:e], (neg_samples, 1)), h0[2 * e:],
              jnp.tile(h1[:e], (neg_samples, 1)), h1[2 * e:])
    return pos, neg


# --------------------------------------------------------------------------- #
if __name__ == "__main__":
    dim_out = 32
    num_edge = 12          # not tile-aligned -> exercises the ragged-tile path
    neg_samples = 2
    c = 1.0
    total = (neg_samples + 2) * num_edge     # 48 rows

    key = jax.random.PRNGKey(0)
    k0, k1, kp = jax.random.split(key, 3)
    # h0: hyperbolic embeddings (inside the Poincare ball: ||x|| < 1/sqrt(c))
    h0 = 0.1 * jax.random.normal(k0, (total, dim_out), jnp.float32)
    # h1: Euclidean embeddings
    h1 = jax.random.normal(k1, (total, dim_out), jnp.float32)
    params = init_params(kp, dim_out)

    fwd = jax.jit(link_decoder_forward,
                  static_argnames=("c", "neg_samples", "tile_rows", "stream_dtype"))

    # f32 streaming, small tile -> 2 edge tiles x 3 samples, ragged last tile.
    pos_scores, neg_scores = fwd(h0, h1, params, c=c,
                                 neg_samples=neg_samples, tile_rows=8)
    pos_scores = jax.block_until_ready(pos_scores)
    neg_scores = jax.block_until_ready(neg_scores)

    # same invariants the torch module asserts
    assert pos_scores.shape == (num_edge,)
    assert neg_scores.shape == (neg_samples * num_edge,)
    assert float(jnp.min(pos_scores)) >= 0.0 and float(jnp.max(pos_scores)) <= 1.0
    assert float(jnp.min(neg_scores)) >= 0.0 and float(jnp.max(neg_scores)) <= 1.0

    ref_pos, ref_neg = _reference_forward(h0, h1, params, c, neg_samples)
    assert float(jnp.max(jnp.abs(pos_scores - ref_pos))) < 5e-3
    assert float(jnp.max(jnp.abs(neg_scores - ref_neg))) < 5e-3

    # bf16 input-streaming path (halves HBM traffic on v6e/v7x); looser tolerance.
    pos_bf, neg_bf = fwd(h0, h1, params, c=c, neg_samples=neg_samples,
                         tile_rows=1024, stream_dtype=jnp.bfloat16)
    pos_bf = jax.block_until_ready(pos_bf)
    neg_bf = jax.block_until_ready(neg_bf)
    assert pos_bf.shape == (num_edge,)
    assert neg_bf.shape == (neg_samples * num_edge,)
    assert float(jnp.max(jnp.abs(pos_bf - ref_pos))) < 5e-2
    assert float(jnp.max(jnp.abs(neg_bf - ref_neg))) < 5e-2

    print("KERNEL_OK")
</pallas_src>

<mosaic_0001>
module attributes {stable_mosaic.version = 11 : i64} {
  func.func @_link_decode_kernel(%arg0: i32, %arg1: i32, %arg2: memref<1x8x32xf32, #tpu.memory_space<vmem>>, %arg3: memref<1x8x32xf32, #tpu.memory_space<vmem>>, %arg4: memref<1x8x32xf32, #tpu.memory_space<vmem>>, %arg5: memref<1x8x32xf32, #tpu.memory_space<vmem>>, %arg6: memref<32x32xf32, #tpu.memory_space<vmem>>, %arg7: memref<32x32xf32, #tpu.memory_space<vmem>>, %arg8: memref<1x32xf32, #tpu.memory_space<vmem>>, %arg9: memref<1x32xf32, #tpu.memory_space<vmem>>, %arg10: memref<1x1xf32, #tpu.memory_space<vmem>>, %arg11: memref<1x32xf32, #tpu.memory_space<vmem>>, %arg12: memref<1x8x1xf32, #tpu.memory_space<vmem>>) attributes {dimension_semantics = [#tpu.dimension_semantics<parallel>, #tpu.dimension_semantics<arbitrary>], iteration_bounds = array<i64: 2, 3>, scalar_prefetch = 0 : i64, scratch_operands = 0 : i64, tpu.core_type = #tpu.core_type<tc>, window_params = [{transform_indices = @transform_0, window_bounds = array<i64: 1, 8, 32>}, {transform_indices = @transform_1, window_bounds = array<i64: 1, 8, 32>}, {transform_indices = @transform_2, window_bounds = array<i64: 1, 8, 32>}, {transform_indices = @transform_3, window_bounds = array<i64: 1, 8, 32>}, {pipeline_mode = #tpu.pipeline_mode<synchronous>, transform_indices = @transform_4, window_bounds = array<i64: 32, 32>}, {pipeline_mode = #tpu.pipeline_mode<synchronous>, transform_indices = @transform_5, window_bounds = array<i64: 32, 32>}, {pipeline_mode = #tpu.pipeline_mode<synchronous>, transform_indices = @transform_6, window_bounds = array<i64: 1, 32>}, {pipeline_mode = #tpu.pipeline_mode<synchronous>, transform_indices = @transform_7, window_bounds = array<i64: 1, 32>}, {pipeline_mode = #tpu.pipeline_mode<synchronous>, transform_indices = @transform_8, window_bounds = array<i64: 1, 1>}, {pipeline_mode = #tpu.pipeline_mode<synchronous>, transform_indices = @transform_9, window_bounds = array<i64: 1, 32>}, {transform_indices = @transform_10, window_bounds = array<i64: 1, 8, 1>}]} {
    %c0 = arith.constant 0 : index
    %c0_0 = arith.constant 0 : index
    %c0_1 = arith.constant 0 : index
    %0 = vector.load %arg2[%c0, %c0_0, %c0_1] : memref<1x8x32xf32, #tpu.memory_space<vmem>>, vector<1x8x32xf32>
    %1 = vector.shape_cast %0 : vector<1x8x32xf32> to vector<8x32xf32>
    %c0_2 = arith.constant 0 : index
    %c0_3 = arith.constant 0 : index
    %c0_4 = arith.constant 0 : index
    %2 = vector.load %arg3[%c0_2, %c0_3, %c0_4] : memref<1x8x32xf32, #tpu.memory_space<vmem>>, vector<1x8x32xf32>
    %3 = vector.shape_cast %2 : vector<1x8x32xf32> to vector<8x32xf32>
    %4 = arith.mulf %1, %1 : vector<8x32xf32>
    %cst = arith.constant dense<0.000000e+00> : vector<8xf32>
    %5 = vector.multi_reduction <add>, %4, %cst [1] : vector<8x32xf32> to vector<8xf32>
    %6 = vector.shape_cast %5 : vector<8xf32> to vector<8x1xf32>
    %7 = arith.mulf %3, %3 : vector<8x32xf32>
    %cst_5 = arith.constant dense<0.000000e+00> : vector<8xf32>
    %8 = vector.multi_reduction <add>, %7, %cst_5 [1] : vector<8x32xf32> to vector<8xf32>
    %9 = vector.shape_cast %8 : vector<8xf32> to vector<8x1xf32>
    %10 = arith.mulf %1, %3 : vector<8x32xf32>
    %cst_6 = arith.constant dense<0.000000e+00> : vector<8xf32>
    %11 = vector.multi_reduction <add>, %10, %cst_6 [1] : vector<8x32xf32> to vector<8xf32>
    %12 = vector.shape_cast %11 : vector<8xf32> to vector<8x1xf32>
    %cst_7 = arith.constant 2.000000e+00 : f32
    %13 = vector.broadcast %cst_7 : f32 to vector<8x1xf32>
    %14 = arith.mulf %13, %12 : vector<8x1xf32>
    %cst_8 = arith.constant 1.000000e+00 : f32
    %15 = vector.broadcast %cst_8 : f32 to vector<8x1xf32>
    %16 = arith.subf %15, %14 : vector<8x1xf32>
    %cst_9 = arith.constant 1.000000e+00 : f32
    %17 = vector.broadcast %cst_9 : f32 to vector<8x1xf32>
    %18 = arith.mulf %17, %9 : vector<8x1xf32>
    %19 = arith.addf %16, %18 : vector<8x1xf32>
    %cst_10 = arith.constant 0.000000e+00 : f32
    %20 = vector.broadcast %cst_10 : f32 to vector<8x1xf32>
    %21 = arith.subf %20, %19 : vector<8x1xf32>
    %cst_11 = arith.constant 1.000000e+00 : f32
    %22 = vector.broadcast %cst_11 : f32 to vector<8x1xf32>
    %23 = arith.mulf %22, %6 : vector<8x1xf32>
    %cst_12 = arith.constant 1.000000e+00 : f32
    %24 = vector.broadcast %cst_12 : f32 to vector<8x1xf32>
    %25 = arith.subf %24, %23 : vector<8x1xf32>
    %cst_13 = arith.constant 2.000000e+00 : f32
    %26 = vector.broadcast %cst_13 : f32 to vector<8x1xf32>
    %27 = arith.mulf %26, %12 : vector<8x1xf32>
    %cst_14 = arith.constant 1.000000e+00 : f32
    %28 = vector.broadcast %cst_14 : f32 to vector<8x1xf32>
    %29 = arith.subf %28, %27 : vector<8x1xf32>
    %cst_15 = arith.constant 1.000000e+00 : f32
    %30 = vector.broadcast %cst_15 : f32 to vector<8x1xf32>
    %31 = arith.mulf %30, %6 : vector<8x1xf32>
    %32 = arith.mulf %31, %9 : vector<8x1xf32>
    %33 = arith.addf %29, %32 : vector<8x1xf32>
    %cst_16 = arith.constant 1.000000e-15 : f32
    %34 = vector.broadcast %cst_16 : f32 to vector<8x1xf32>
    %35 = arith.maximumf %33, %34 : vector<8x1xf32>
    %36 = arith.mulf %21, %21 : vector<8x1xf32>
    %37 = arith.mulf %36, %6 : vector<8x1xf32>
    %cst_17 = arith.constant 2.000000e+00 : f32
    %38 = vector.broadcast %cst_17 : f32 to vector<8x1xf32>
    %39 = arith.mulf %38, %21 : vector<8x1xf32>
    %40 = arith.mulf %39, %25 : vector<8x1xf32>
    %41 = arith.mulf %40, %12 : vector<8x1xf32>
    %42 = arith.addf %37, %41 : vector<8x1xf32>
    %43 = arith.mulf %25, %25 : vector<8x1xf32>
    %44 = arith.mulf %43, %9 : vector<8x1xf32>
    %45 = arith.addf %42, %44 : vector<8x1xf32>
    %cst_18 = arith.constant 0.000000e+00 : f32
    %46 = vector.broadcast %cst_18 : f32 to vector<8x1xf32>
    %47 = arith.maximumf %45, %46 : vector<8x1xf32>
    %48 = math.sqrt %47 : vector<8x1xf32>
    %49 = arith.divf %48, %35 : vector<8x1xf32>
    %cst_19 = arith.constant 1.000000e+00 : f32
    %50 = vector.broadcast %cst_19 : f32 to vector<8x1xf32>
    %51 = arith.mulf %50, %49 : vector<8x1xf32>
    %cst_20 = arith.constant 0.000000e+00 : f32
    %cst_21 = arith.constant 0.999989986 : f32
    %52 = vector.broadcast %cst_20 : f32 to vector<8x1xf32>
    %53 = arith.maximumf %52, %51 : vector<8x1xf32>
    %54 = vector.broadcast %cst_21 : f32 to vector<8x1xf32>
    %55 = arith.minimumf %54, %53 : vector<8x1xf32>
    %cst_22 = arith.constant 1.000000e+00 : f32
    %56 = vector.broadcast %cst_22 : f32 to vector<8x1xf32>
    %57 = arith.addf %56, %55 : vector<8x1xf32>
    %cst_23 = arith.constant 1.000000e+00 : f32
    %58 = vector.broadcast %cst_23 : f32 to vector<8x1xf32>
    %59 = arith.subf %58, %55 : vector<8x1xf32>
    %60 = arith.divf %57, %59 : vector<8x1xf32>
    %61 = math.log %60 : vector<8x1xf32>
    %cst_24 = arith.constant 1.000000e+00 : f32
    %62 = vector.broadcast %cst_24 : f32 to vector<8x1xf32>
    %63 = arith.mulf %62, %61 : vector<8x1xf32>
    %64 = arith.mulf %63, %63 : vector<8x1xf32>
    %cst_25 = arith.constant 2.000000e+00 : f32
    %65 = vector.broadcast %cst_25 : f32 to vector<8x1xf32>
    %66 = arith.subf %65, %64 : vector<8x1xf32>
    %cst_26 = arith.constant 1.000000e+00 : f32
    %67 = vector.broadcast %cst_26 : f32 to vector<8x1xf32>
    %68 = arith.mulf %66, %67 : vector<8x1xf32>
    %69 = arith.negf %68 : vector<8x1xf32>
    %70 = math.exp %69 : vector<8x1xf32>
    %cst_27 = arith.constant 1.000000e+00 : f32
    %71 = vector.broadcast %cst_27 : f32 to vector<8x1xf32>
    %72 = arith.addf %71, %70 : vector<8x1xf32>
    %73 = arith.divf %71, %72 : vector<8x1xf32>
    %c0_28 = arith.constant 0 : index
    %c0_29 = arith.constant 0 : index
    %c0_30 = arith.constant 0 : index
    %74 = vector.load %arg4[%c0_28, %c0_29, %c0_30] : memref<1x8x32xf32, #tpu.memory_space<vmem>>, vector<1x8x32xf32>
    %75 = vector.shape_cast %74 : vector<1x8x32xf32> to vector<8x32xf32>
    %c0_31 = arith.constant 0 : index
    %c0_32 = arith.constant 0 : index
    %76 = vector.load %arg6[%c0_31, %c0_32] : memref<32x32xf32, #tpu.memory_space<vmem>>, vector<32x32xf32>
    %cst_33 = arith.constant dense<0.000000e+00> : vector<8x32xf32>
    %77 = tpu.matmul %75, %76, %cst_33 {dimension_numbers = #tpu.dot_dimension_numbers<[1], [0], [0], [1], [0, 0, 1, 1], [], []>} : vector<8x32xf32>, vector<32x32xf32>, vector<8x32xf32> -> vector<8x32xf32>
    %c0_34 = arith.constant 0 : index
    %c0_35 = arith.constant 0 : index
    %c0_36 = arith.constant 0 : index
    %78 = vector.load %arg5[%c0_34, %c0_35, %c0_36] : memref<1x8x32xf32, #tpu.memory_space<vmem>>, vector<1x8x32xf32>
    %79 = vector.shape_cast %78 : vector<1x8x32xf32> to vector<8x32xf32>
    %c0_37 = arith.constant 0 : index
    %c0_38 = arith.constant 0 : index
    %80 = vector.load %arg7[%c0_37, %c0_38] : memref<32x32xf32, #tpu.memory_space<vmem>>, vector<32x32xf32>
    %cst_39 = arith.constant dense<0.000000e+00> : vector<8x32xf32>
    %81 = tpu.matmul %79, %80, %cst_39 {dimension_numbers = #tpu.dot_dimension_numbers<[1], [0], [0], [1], [0, 0, 1, 1], [], []>} : vector<8x32xf32>, vector<32x32xf32>, vector<8x32xf32> -> vector<8x32xf32>
    %82 = arith.addf %77, %81 : vector<8x32xf32>
    %c0_40 = arith.constant 0 : index
    %c0_41 = arith.constant 0 : index
    %83 = vector.load %arg8[%c0_40, %c0_41] : memref<1x32xf32, #tpu.memory_space<vmem>>, vector<1x32xf32>
    %84 = vector.broadcast %83 : vector<1x32xf32> to vector<8x32xf32>
    %85 = arith.addf %82, %84 : vector<8x32xf32>
    %cst_42 = arith.constant 0.000000e+00 : f32
    %86 = vector.broadcast %cst_42 : f32 to vector<8x32xf32>
    %87 = arith.maximumf %85, %86 : vector<8x32xf32>
    %c0_43 = arith.constant 0 : index
    %c0_44 = arith.constant 0 : index
    %88 = vector.load %arg9[%c0_43, %c0_44] : memref<1x32xf32, #tpu.memory_space<vmem>>, vector<1x32xf32>
    %89 = vector.broadcast %88 : vector<1x32xf32> to vector<8x32xf32>
    %90 = arith.mulf %87, %89 : vector<8x32xf32>
    %cst_45 = arith.constant dense<0.000000e+00> : vector<8xf32>
    %91 = vector.multi_reduction <add>, %90, %cst_45 [1] : vector<8x32xf32> to vector<8xf32>
    %92 = vector.shape_cast %91 : vector<8xf32> to vector<8x1xf32>
    %c0_46 = arith.constant 0 : index
    %c0_47 = arith.constant 0 : index
    %93 = vector.load %arg10[%c0_46, %c0_47] : memref<1x1xf32, #tpu.memory_space<vmem>>, vector<1x1xf32>
    %94 = vector.broadcast %93 : vector<1x1xf32> to vector<8x1xf32>
    %95 = arith.addf %92, %94 : vector<8x1xf32>
    %96 = arith.negf %95 : vector<8x1xf32>
    %97 = math.exp %96 : vector<8x1xf32>
    %cst_48 = arith.constant 1.000000e+00 : f32
    %98 = vector.broadcast %cst_48 : f32 to vector<8x1xf32>
    %99 = arith.addf %98, %97 : vector<8x1xf32>
    %100 = arith.divf %98, %99 : vector<8x1xf32>
    %c0_49 = arith.constant 0 : index
    %c0_50 = arith.constant 0 : index
    %101 = vector.load %arg11[%c0_49, %c0_50] : memref<1x32xf32, #tpu.memory_space<vmem>>, vector<1x32xf32>
    %102 = vector.broadcast %101 : vector<1x32xf32> to vector<8x32xf32>
    %103 = arith.mulf %85, %102 : vector<8x32xf32>
    %cst_51 = arith.constant dense<0.000000e+00> : vector<8xf32>
    %104 = vector.multi_reduction <add>, %103, %cst_51 [1] : vector<8x32xf32> to vector<8xf32>
    %105 = vector.shape_cast %104 : vector<8xf32> to vector<8x1xf32>
    %106 = arith.negf %105 : vector<8x1xf32>
    %107 = math.exp %106 : vector<8x1xf32>
    %cst_52 = arith.constant 1.000000e+00 : f32
    %108 = vector.broadcast %cst_52 : f32 to vector<8x1xf32>
    %109 = arith.addf %108, %107 : vector<8x1xf32>
    %110 = arith.divf %108, %109 : vector<8x1xf32>
    %111 = arith.subf %100, %73 : vector<8x1xf32>
    %112 = arith.mulf %110, %111 : vector<8x1xf32>
    %113 = arith.addf %73, %112 : vector<8x1xf32>
    %c0_53 = arith.constant 0 : index
    %c0_54 = arith.constant 0 : index
    %c0_55 = arith.constant 0 : index
    %114 = vector.load %arg12[%c0_53, %c0_54, %c0_55] : memref<1x8x1xf32, #tpu.memory_space<vmem>>, vector<1x8x1xf32>
    %115 = vector.shape_cast %114 : vector<1x8x1xf32> to vector<8x1xf32>
    %116 = vector.shape_cast %113 : vector<8x1xf32> to vector<1x8x1xf32>
    tpu.vector_store %arg12[%c0_53, %c0_54, %c0_55], %116 {strides = array<i32>} : memref<1x8x1xf32, #tpu.memory_space<vmem>>, vector<1x8x1xf32>,
    return
  }
  func.func @transform_0(%arg0: i32, %arg1: i32) -> (i32, i32, i32) {
    %c0_i32 = arith.constant 0 : i32
    %c0_i32_0 = arith.constant 0 : i32
    %c0_i32_1 = arith.constant 0 : i32
    return %c0_i32, %arg0, %c0_i32_0 : i32, i32, i32
  }
  func.func @transform_1(%arg0: i32, %arg1: i32) -> (i32, i32, i32) {
    %c1_i32 = arith.constant 1 : i32
    %0 = arith.addi %c1_i32, %arg1 : i32
    %c0_i32 = arith.constant 0 : i32
    %c0_i32_0 = arith.constant 0 : i32
    return %0, %arg0, %c0_i32 : i32, i32, i32
  }
  func.func @transform_2(%arg0: i32, %arg1: i32) -> (i32, i32, i32) {
    %c0_i32 = arith.constant 0 : i32
    %c0_i32_0 = arith.constant 0 : i32
    %c0_i32_1 = arith.constant 0 : i32
    return %c0_i32, %arg0, %c0_i32_0 : i32, i32, i32
  }
  func.func @transform_3(%arg0: i32, %arg1: i32) -> (i32, i32, i32) {
    %c1_i32 = arith.constant 1 : i32
    %0 = arith.addi %c1_i32, %arg1 : i32
    %c0_i32 = arith.constant 0 : i32
    %c0_i32_0 = arith.constant 0 : i32
    return %0, %arg0, %c0_i32 : i32, i32, i32
  }
  func.func @transform_4(%arg0: i32, %arg1: i32) -> (i32, i32) {
    %c0_i32 = arith.constant 0 : i32
    %c0_i32_0 = arith.constant 0 : i32
    %c0_i32_1 = arith.constant 0 : i32
    return %c0_i32, %c0_i32_0 : i32, i32
  }
  func.func @transform_5(%arg0: i32, %arg1: i32) -> (i32, i32) {
    %c0_i32 = arith.constant 0 : i32
    %c0_i32_0 = arith.constant 0 : i32
    %c0_i32_1 = arith.constant 0 : i32
    return %c0_i32, %c0_i32_0 : i32, i32
  }
  func.func @transform_6(%arg0: i32, %arg1: i32) -> (i32, i32) {
    %c0_i32 = arith.constant 0 : i32
    %c0_i32_0 = arith.constant 0 : i32
    %c0_i32_1 = arith.constant 0 : i32
    return %c0_i32, %c0_i32_0 : i32, i32
  }
  func.func @transform_7(%arg0: i32, %arg1: i32) -> (i32, i32) {
    %c0_i32 = arith.constant 0 : i32
    %c0_i32_0 = arith.constant 0 : i32
    %c0_i32_1 = arith.constant 0 : i32
    return %c0_i32, %c0_i32_0 : i32, i32
  }
  func.func @transform_8(%arg0: i32, %arg1: i32) -> (i32, i32) {
    %c0_i32 = arith.constant 0 : i32
    %c0_i32_0 = arith.constant 0 : i32
    %c0_i32_1 = arith.constant 0 : i32
    return %c0_i32, %c0_i32_0 : i32, i32
  }
  func.func @transform_9(%arg0: i32, %arg1: i32) -> (i32, i32) {
    %c0_i32 = arith.constant 0 : i32
    %c0_i32_0 = arith.constant 0 : i32
    %c0_i32_1 = arith.constant 0 : i32
    return %c0_i32, %c0_i32_0 : i32, i32
  }
  func.func @transform_10(%arg0: i32, %arg1: i32) -> (i32, i32, i32) {
    %c0_i32 = arith.constant 0 : i32
    %c0_i32_0 = arith.constant 0 : i32
    return %arg1, %arg0, %c0_i32 : i32, i32, i32
  }
}

</mosaic_0001>

<bundles_post_ra>
// kernel: squeeze.3
= control target key start
LH: loop header
LB: loop body
LE: loop exit
PB: predicated region body
PF: predicated region fallthrough
CT: control target
= control target key end

     0   :  { %s85_s0 = inlined_call_operand.vmem [shape: f32[2,12], index: 0, kind: input, shape index: {}]   ;;  %s86_s1 = inlined_call_operand.hbm [shape: f32[24], index: 1, kind: output, shape index: {}]  }
   0x1   :  { %v5_v0 = vld [vmem:[%s85_s0] sm:$0x3] }
   0x2   :  { %6 = vst [vmem:[#allocation3] sm:$0x3] %v5_v0 }
   0x3   :  { %2 = vsyncpa [#allocation1], 0  ;;  %vm8_vm0 = vcmask 97280   ;;  %s58_s0 = smov 12   ;;  %vm14_vm1 = vcmask 195680   ;;  %s59_s8 = smov [#allocation0]  }
   0x4   :  { %s26_s9 = sshll.u32 %s59_s8, 4  ;;  %s27_s9 = int_to_ptr.vmem [resolvable:$true] %s26_s9 }
   0x5   :  { %s34_s10 = scalar_lea.vmem %s27_s9, 16  ;;  %s38_s11 = scalar_lea.vmem %s27_s9, 32 }
   0x6   :  { %p35_p0 = scmp.ne.s32.totalorder %s27_s9, %s34_s10  ;;  %p39_p1 = scmp.lt.s32.totalorder %s27_s9, %s27_s9 }
   0x7   :  { %p40_p2 = scmp.lt.s32.totalorder %s38_s11, %s34_s10 }
   0x9   :  { %v11_v1 = vld [vmem:[#allocation3 + $0x1] sm:$0x1]   ;;  %v7_v2 = vld [vmem:[#allocation3] sm:$0x1]   ;;  %p41_p3 = por %p40_p2, %p39_p1 }
   0xa   :  { %12 = vrot.lane.b32.xlu0 %v11_v1, %s58_s0  ;;  %9 = vst.msk [vmem:[#allocation2] sm:$0x1] %vm8_vm0, %v7_v2  }
   0xb   :  { %p42_p4 = pnand %p41_p3, %p35_p0 }
  0x7c   :  { %v13_v3 = vpop.permute.xlu0 %12  }
  0x7d   :  { %15 = vst.msk [vmem:[#allocation2] sm:$0x1] %vm14_vm1, %v13_v3  }
  0x84   :  { %v19_v4 = vld [vmem:[#allocation2] sm:$0x1] }
  0x85   :  { %21 = vst [vmem:[#allocation0] sm:$0x1] %v19_v4 }
  0x86   :  { %45 = shalt.err (!%p42_p4)
}
  0x87   :  { %s46_s14 = scalar_lea.hbm %s86_s1, 16 }
  0x88   :  { %p47_p5 = scmp.ne.s32.totalorder %s86_s1, %s46_s14  ;;  %p50_p6 = scmp.lt.u32.totalorder %s46_s14, %s86_s1 }
  0x8a   :  { %p52_p7 = pnand %p50_p6, %p47_p5 }
  0x8c   :  { %55 = shalt.err (!%p52_p7)
}
  0x8d   :  { %29 = dma.vmem_to_hbm [thread:$0]  %s27_s9, 16, %s86_s1, [#allocation1]  }
  0x8e   :  { %56 = dma.done.wait [#allocation1], 16  }
  0x8f   :  { %57 = vsyncadd [#allocation1], 4294967280 }
  0x90   :  { %31 = vsyncpa [#allocation1], 1 }

// kernel: link_decoder_forward.1
= control target key start
LH: loop header
LB: loop body
LE: loop exit
PB: predicated region body
PF: predicated region fallthrough
CT: control target
= control target key end

     0   :  { %s1102_s15 = smov 0   ;;  %s1104_s16 = smov 0   ;;  %s1216_s0 = inlined_call_operand.vmem [shape: f32[4,12,32], index: 0, kind: input, shape index: {}, may-alias: {0,1}]   ;;  %s1217_s1 = inlined_call_operand.vmem [shape: f32[4,12,32], index: 1, kind: input, shape index: {}, may-alias: {0,1}]   ;;  %s1218_s2 = inlined_call_operand.vmem [shape: f32[4,12,32], index: 2, kind: input, shape index: {}, may-alias: {2,3}]   ;;  %s1219_s3 = inlined_call_operand.vmem [shape: f32[4,12,32], index: 3, kind: input, shape index: {}, may-alias: {2,3}]   ;;  %s1220_s4 = inlined_call_operand.vmem [shape: f32[32,32], index: 4, kind: input, shape index: {}]   ;;  %s1221_s5 = inlined_call_operand.vmem [shape: f32[32,32], index: 5, kind: input, shape index: {}]   ;;  %s1222_s6 = inlined_call_operand.vmem [shape: f32[1,32], index: 6, kind: input, shape index: {}]   ;;  %s1223_s7 = inlined_call_operand.vmem [shape: f32[1,32], index: 7, kind: input, shape index: {}]   ;;  %s1224_s8 = inlined_call_operand.<no memory space> [shape: f32[1,1], index: 8, kind: input, shape index: {}]   ;;  %s1225_s9 = inlined_call_operand.vmem [shape: f32[1,32], index: 9, kind: input, shape index: {}]   ;;  %s1226_s10 = inlined_call_operand.vmem [shape: f32[3,12,1], index: 10, kind: output, shape index: {}]  }
   0x1   :  { %v15_v0 = vstv %s1224_s8  ;;  %s1106_s17 = smov 0   ;;  %s1108_s18 = smov 0  }
   0x2   :  { %16 = vst [vmem:[#allocation2] sm:$0x1] %v15_v0  ;;  %s1110_s19 = smov 0  }
   0x3 LB: > { %s31_s8 = sadd.s32 1, %s1031_s17  ;;  %s34_s20 = sadd.s32 1, %s1035_s18  ;;  %s1039_s19 = sphi %s1110_s19, %s22_s19   ;;  %s1035_s18 = sphi %s1108_s18, %s1230_s18   ;;  %s1031_s17 = sphi %s1106_s17, %s1229_s17   ;;  %s1027_s16 = sphi %s1104_s16, %s1228_s16   ;;  %s1023_s15 = sphi %s1102_s15, %s1227_s15  }
   0x4   : > { %p32_p0 = scmp.ge.s32.totalorder %s31_s8, 3  ;;  %p874_p1 = scmp.ge.s32.totalorder %s1039_s19, 1 }
   0x5   : > { %p374_p2 = scmp.lt.s32.totalorder %s1039_s19, 7 }
   0x6   : > { %s1232_s8 = smov (%p32_p0, %s31_s8), 0  ;;  %s1234_s20 = smov (!%p32_p0, %s34_s20), %s1035_s18 }
   0x7   : > { %p375_p3 = pnand %p874_p1, %p374_p2  ;;  %p36_p4 = scmp.ge.s32.totalorder %s1234_s20, 2 }
   0x8   : > { %v536_v1 = vld [vmem:[%s1221_s5] sm:$0xff] (!%p375_p3)  ;;  %v537_v2 = vld [vmem:[%s1221_s5 + $0x8] sm:$0xff] (!%p375_p3)  ;;  %v1041_v4 = vmov (!%p375_p3), 0.0|0.0   ;;  %v538_v7 = vld [vmem:[%s1221_s5 + $0x10] sm:$0xff] (!%p375_p3)  ;;  %p436_p5 = scmp.lt.s32.totalorder (!%p375_p3), %s1027_s16, 1  ;;  %s440_s13 = sadd.s32 (!%p375_p3), 1, %s1023_s15 }
   0x9   : > { %s1236_s20 = smov (%p36_p4, %s1234_s20), 0  ;;  %378 = sbr.rel (%p375_p3) target bundleno = 420 (0x1a4), region = 60 }
   0xa   : > { %v531_v3 = vld [vmem:[%s1220_s4] sm:$0xff] (!%p375_p3)  ;;  %926 = vmatprep.subr.bf16.mxu0 (!%p375_p3), %v1041_v4  ;;  %932 = vmatprep.subr.bf16.mxu1 (!%p375_p3), %v1041_v4  ;;  %v927_v5 = vpack.c.bf16 (!%p375_p3), %v537_v2, %v536_v1  ;;  %v532_v6 = vld [vmem:[%s1220_s4 + $0x8] sm:$0xff] (!%p375_p3)  ;;  %v539_v8 = vld [vmem:[%s1221_s5 + $0x18] sm:$0xff] (!%p375_p3)  ;;  %vm1042_vm0 = vmmov (!%p375_p3), 0   ;;  %v1043_v12 = vmov (!%p375_p3), 0.0   ;;  %p441_p6 = scmp.lt.s32.totalorder (!%p375_p3), %s440_s13, 3 }
   0xb   : > { %v933_v9 = vpack.c.bf16 (!%p375_p3), %v532_v6, %v531_v3  ;;  %v533_v10 = vld [vmem:[%s1220_s4 + $0x10] sm:$0xff] (!%p375_p3)  ;;  %v534_v11 = vld [vmem:[%s1220_s4 + $0x18] sm:$0xff] (!%p375_p3)  ;;  %912 = vmatprep.mubr.msk.f32.mxu0 (!%p375_p3), %vm1042_vm0, %v1043_v12  ;;  %923 = vmatprep.mubr.msk.f32.mxu1 (!%p375_p3), %vm1042_vm0, %v1043_v12  ;;  %v930_v13 = vpack.c.bf16 (!%p375_p3), %v539_v8, %v538_v7  ;;  %vm475_vm1 = vcmask (!%p375_p3), 261120   ;;  %v886_v27 = vld [vmem:[%s1222_s6] ss:$0 sm:$0xff] (!%p375_p3)  ;;  %p464_p7 = scmp.lt.s32.totalorder (!%p375_p3), %s1023_s15, 2 }
   0xc   : > { %928 = vmatpush3.bf16.msra.mxu0 (!%p375_p3), %v927_v5  ;;  %v936_v14 = vpack.c.bf16 (!%p375_p3), %v534_v11, %v533_v10  ;;  %v890_v31 = vld [vmem:[%s1225_s9] ss:$0 sm:$0xff] (!%p375_p3)  ;;  %vm740_vm4 = vcmask (!%p375_p3), 7168  }
   0xd   : > { %934 = vmatpush3.bf16.msra.mxu1 (!%p375_p3), %v933_v9  ;;  %929 = vmatprep.subr.bf16.mxu0 (!%p375_p3), %v1041_v4  ;;  %v887_v33 = vld [vmem:[%s1223_s7] ss:$0 sm:$0xff] (!%p375_p3) }
   0xe   : > { %935 = vmatprep.subr.bf16.mxu1 (!%p375_p3), %v1041_v4 }
  0x10   : > { %s1238_s16 = smov (!%p436_p5, %s1027_s16), 1  ;;  %s1240_s13 = smov (!%p441_p6, %s440_s13), 3  ;;  %931 = vmatpush3.bf16.msra.mxu0 %v930_v13 }
  0x11   : > { %s876_s24 = sshll.u32 %s1240_s13, 1  ;;  %s875_s26 = sshll.u32 %s1238_s16, 3  ;;  %937 = vmatpush3.bf16.msra.mxu1 %v936_v14 }
  0x12   : > { %s446_s25 = sadd.s32 %s876_s24, %s1238_s16  ;;  %s453_s14 = scalar_lea.vmem %s1218_s2, %s875_s26 }
  0x13   : > { %s877_s27 = sshll.u32 %s446_s25, 3  ;;  %v530_v16 = vld [vmem:[%s453_s14] sm:$0xff]  ;;  %s439_s22 = scalar_lea.vmem %s1216_s0, %s875_s26 }
  0x14   : > { %s462_s30 = scalar_lea.vmem %s1219_s3, %s877_s27  ;;  %s448_s25 = scalar_lea.vmem %s1217_s1, %s877_s27  ;;  %924 = vmatmul.mubr.msk.f32.vlgmr.msra.gmra.mrb[0].mxu1 %vm475_vm1, %v530_v16  ;;  %v472_v17 = vld [vmem:[%s439_s22] sm:$0xff] }
  0x15   : > { %v535_v15 = vld [vmem:[%s462_s30] sm:$0xff]  ;;  %v474_v21 = vmul.f32 %v472_v17, %v472_v17  ;;  %s1242_s15 = smov (!%p464_p7, %s1023_s15), 2 }
  0x16   : > { %913 = vmatmul.mubr.msk.f32.vlgmr.msra.gmra.mrb[0].mxu0 %vm475_vm1, %v535_v15  ;;  %v473_v18 = vld [vmem:[%s448_s25] sm:$0xff]  ;;  %s881_s12 = sshll.u32 %s1242_s15, 1 }
  0x17   : > { %v483_v19 = vmul.f32 %v473_v18, %v472_v17  ;;  %v479_v20 = vmul.f32 %v473_v18, %v473_v18  ;;  %v476_v23 = vsel %vm475_vm1, %v474_v21, 0.0  ;;  %v888_v15 = vld [vmem:[#allocation2] ss:$0 sm:$0xff]  ;;  %s469_s14 = sadd.s32 %s881_s12, %s1238_s16 }
  0x18   : > { %477 = vadd.xlane.f32.xlu1 %v476_v23  ;;  %s882_s21 = sshll.u32 %s469_s14, 3 }
  0x19   : > { %v484_v22 = vsel %vm475_vm1, %v483_v19, 0.0  ;;  %v480_v24 = vsel %vm475_vm1, %v479_v20, 0.0  ;;  %s471_s23 = scalar_lea.vmem %s1226_s10, %s882_s21 }
  0x1a   : > { %485 = vadd.xlane.f32.xlu0 %v484_v22 }
  0x1e   : > { %481 = vadd.xlane.f32.xlu0 %v480_v24 }
  0xa5   : > { %v478_v45 = vpop.xlane.xlu1 %477 }
  0xa6   : > { %v491_v47 = vsub.f32 1.0, %v478_v45 }
  0xa7   : > { %v486_v39 = vpop.xlane.xlu0 %485 }
  0xa8   : > { %v487_v40 = vmul.f32 2.0, %v486_v39  ;;  %v501_v52 = vmul.f32 %v491_v47, %v491_v47 }
  0xaa   : > { %v488_v41 = vsub.f32 1.0, %v487_v40 }
  0xab   : > { %v482_v42 = vpop.xlane.xlu0 %481 }
  0xac   : > { %v489_v43 = vadd.f32 %v488_v41, %v482_v42  ;;  %v502_v54 = vmul.f32 %v501_v52, %v482_v42  ;;  %v492_v57 = vmul.f32 %v482_v42, %v478_v45 }
  0xae   : > { %v490_v44 = vsub.f32 0.0, %v489_v43  ;;  %v493_v58 = vadd.f32 %v492_v57, %v488_v41 }
  0xb0   : > { %v497_v46 = vmul.f32 2.0, %v490_v44  ;;  %v495_v48 = vmul.f32 %v490_v44, %v490_v44  ;;  %v494_v59 = vmax.f32 %v493_v58, 1e-15 }
  0xb2   : > { %v498_v49 = vmul.f32 %v497_v46, %v491_v47  ;;  %v496_v50 = vmul.f32 %v495_v48, %v478_v45 }
  0xb4   : > { %v499_v51 = vmul.f32 %v498_v49, %v486_v39 }
  0xb6   : > { %v500_v53 = vadd.f32 %v499_v51, %v496_v50 }
  0xb8   : > { %v503_v55 = vadd.f32 %v502_v54, %v500_v53 }
  0xba   : > { %v504_v56 = vmax.f32 %v503_v55, 0.0 }
  0xbc   : > { %981 = vrsqrt.f32 %v504_v56  ;;  %vm507_vm2 = vcmp.eq.f32.partialorder %v504_v56, inf  ;;  %v510_v62 = vand.u32 2147483648, %v504_v56  ;;  %vm509_vm3 = vcmp.eq.f32.partialorder %v504_v56, 0.0 }
  0xbd   : > { %983 = vrcp.f32 %v494_v59 }
  0xc6   : > { %v982_v60 = vpop.eup %981 }
  0xc7   : > { %v506_v61 = vmul.f32 %v982_v60, %v504_v56  ;;  %v984_v0 = vpop.eup %983 }
  0xc9   : > { %v508_v63 = vsel %vm507_vm2, %v504_v56, %v506_v61 }
  0xca   : > { %v511_v1 = vsel %vm509_vm3, %v510_v62, %v508_v63 }
  0xcb   : > { %v513_v2 = vmul.f32 %v984_v0, %v511_v1 }
  0xcd   : > { %v514_v3 = vmax.f32 %v513_v2, 0.0 }
  0xcf   : > { %v515_v4 = vmin.f32 %v514_v3, 0.99999 }
  0xd1   : > { %v517_v5 = vsub.f32 1.0, %v515_v4  ;;  %v516_v6 = vadd.f32 1.0, %v515_v4 }
  0xd3   : > { %985 = vrcp.f32 %v517_v5 }
  0xdd   : > { %v986_v7 = vpop.eup %985 }
  0xde   : > { %v519_v8 = vmul.f32 %v986_v7, %v516_v6 }
  0xe0   : > { %987 = vlog2.f32 %v519_v8 }
  0xe7   : > { %v682_v26 = vpop.f32.mrb[0].mxu1 }
  0xe8   : > { %v925_v30 = vpop.f32.mrb[1].mxu1 }
  0xe9   : > { %v609_v25 = vpop.f32.mrb[0].mxu0 }
  0xea   : > { %v914_v28 = vpop.f32.mrb[1].mxu0  ;;  %v683_v29 = vadd.f32 %v682_v26, %v609_v25  ;;  %v988_v9 = vpop.eup %987 }
  0xeb   : > { %v521_v10 = vmul.f32 0.6931472, %v988_v9 }
  0xec   : > { %v693_v32 = vadd.f32 %v886_v27, %v683_v29 }
  0xed   : > { %v522_v11 = vmul.f32 %v521_v10, %v521_v10 }
  0xee   : > { %v727_v34 = vmul.f32 %v890_v31, %v693_v32  ;;  %v694_v35 = vmax.f32 %v693_v32, 0.0 }
  0xef   : > { %v523_v12 = vsub.f32 2.0, %v522_v11 }
  0xf0   : > { %v728_v36 = vsel %vm475_vm1, %v727_v34, 0.0  ;;  %v702_v37 = vmul.f32 %v887_v33, %v694_v35 }
  0xf1   : > { %729 = vadd.xlane.f32.xlu0 %v728_v36  ;;  %v883_v13 = vmul.f32 -1.442695, %v523_v12 }
  0xf2   : > { %v703_v38 = vsel %vm475_vm1, %v702_v37, 0.0 }
  0xf3   : > { %704 = vadd.xlane.f32.xlu1 %v703_v38  ;;  %989 = vpow2.f32 %v883_v13 }
  0xfd   : > { %v990_v20 = vpop.eup %989 }
  0xfe   : > { %v527_v22 = vadd.f32 1.0, %v990_v20 }
 0x17e   : > { %v730_v14 = vpop.xlane.xlu0 %729 }
 0x17f   : > { %v891_v16 = vmul.f32 -1.442695, %v730_v14 }
 0x180   : > { %v705_v17 = vpop.xlane.xlu1 %704 }
 0x181   : > { %v713_v18 = vadd.f32 %v888_v15, %v705_v17  ;;  %991 = vpow2.f32 %v891_v16 }
 0x183   : > { %v889_v19 = vmul.f32 -1.442695, %v713_v18 }
 0x185   : > { %993 = vpow2.f32 %v889_v19 }
 0x186   : > { %995 = vrcp.f32 %v527_v22 }
 0x18b   : > { %v992_v21 = vpop.eup %991 }
 0x18c   : > { %v734_v24 = vadd.f32 1.0, %v992_v21 }
 0x18f   : > { %v994_v23 = vpop.eup %993 }
 0x190   : > { %v717_v25 = vadd.f32 1.0, %v994_v23  ;;  %v996_v26 = vpop.eup %995 }
 0x192   : > { %997 = vrcp.f32 %v717_v25 }
 0x193   : > { %999 = vrcp.f32 %v734_v24 }
 0x19c   : > { %v998_v27 = vpop.eup %997 }
 0x19d   : > { %v737_v28 = vsub.f32 %v998_v27, %v996_v26  ;;  %v1000_v29 = vpop.eup %999 }
 0x19f   : > { %v738_v30 = vmul.f32 %v1000_v29, %v737_v28 }
 0x1a1   : > { %v739_v31 = vadd.f32 %v996_v26, %v738_v30 }
 0x1a3   : > { %741 = vst.msk [vmem:[%s471_s23] sm:$0xff] %vm740_vm4, %v739_v31 }
 0x1a4 PF: > { %s22_s19 = sadd.s32 1, %s1039_s19   ;;  %s1227_s15 = smov %s1031_s17 }
 0x1a5   : > { %p19_p8 = scmp.ge.s32.totalorder %s22_s19, 8   ;;  %s1228_s16 = smov %s1035_s18 }
 0x1a6   : > { %s1229_s17 = smov %s1232_s8  ;;  %s1230_s18 = smov %s1236_s20 }
 0x1a7   :  { %21 = sbr.rel (!%p19_p8) target bundleno = 3 (0x3), region = 99 }

</bundles_post_ra>
